<compile_context>
chip_gen: v5e
topology: v5e:2x2
jax: 0.10.0
libtpu: 0.0.40
codegen_flags: <defaults>
</compile_context>

<pallas_src>
import jax
import jax.numpy as jnp
import numpy as np
from jax import lax
from jax.experimental import pallas as pl
from jax.experimental.pallas import tpu as pltpu

KH = KW = 3   # kernel_size=3
EPS = 1e-5    # nn.BatchNorm2d default eps


def _make_kernel(N, HW, Cout):
    """Fused ConvBlock kernel for static shapes (single invocation)."""
    inv_count = 1.0 / float(N * HW)

    def kernel(pt_ref, w_ref, p_ref, o_ref):
        # pt_ref: (KC, N*HW)    im2col patches, contraction-major
        # w_ref : (Cout, KC)    conv weights, (kh, kw, cin) contraction order
        # p_ref : (Cout, 4)     columns: bias, gamma, beta, unused
        # o_ref : (N, Cout, HW) lane-dense output
        bias = p_ref[:, 0:1]
        gamma = p_ref[:, 1:2]
        beta = p_ref[:, 2:3]

        # Conv as a single MXU matmul over the fused (kh, kw, cin) contraction.
        acc = jnp.dot(w_ref[...], pt_ref[...],
                      preferred_element_type=jnp.float32) + bias    # (Cout, N*HW)

        # BatchNorm training-mode batch statistics (centered two-pass, per-channel).
        mean = jnp.sum(acc, axis=-1, keepdims=True) * inv_count     # (Cout, 1)
        centered = acc - mean
        var = jnp.sum(centered * centered, axis=-1, keepdims=True) * inv_count
        scale = gamma * lax.rsqrt(var + EPS)                        # rsqrt -> EUP

        y = jnp.maximum(centered * scale + beta, 0.0)               # FMA + ReLU

        # Per-sample (Cout, HW) slabs; HW is a multiple of 128 here, so every
        # store is a full-width, lane-dense vst (no masked partial stores).
        for n in range(N):
            o_ref[n] = y[:, n * HW:(n + 1) * HW]

    return kernel


def conv_block(x_nchw, weight, bias, gamma, beta):
    """Fused Conv2d(3x3, pad=1) -> BatchNorm2d(train) -> ReLU.

    x_nchw: (N, Cin, H, W); weight: (Cout, Cin, 3, 3). Returns (N, Cout, H, W).
    """
    N, C, H, W = x_nchw.shape
    Cout = weight.shape[0]
    HW = H * W
    KC = KH * KW * C

    # Whole problem must fit comfortably in VMEM for the single-step kernel.
    # TODO(synk): tile over (batch, rows) with a two-phase stats grid (and a
    # cross-core reduce on v7x) once resident activations exceed ~16 MiB.
    resident_bytes = 4 * (KC * N * HW + N * Cout * HW + Cout * (KC + 4))
    assert resident_bytes < 16 * 1024 * 1024

    # Layout prep (small fused XLA preamble): NCHW -> zero-padded NHWC -> im2col.
    # TODO(synk): fold the transpose/pad/im2col into the kernel (halo-aware
    # index_map) for large activations to save this extra HBM pass.
    xf = x_nchw.astype(jnp.float32)
    xp = jnp.pad(jnp.transpose(xf, (0, 2, 3, 1)),
                 ((0, 0), (1, 1), (1, 1), (0, 0)))                 # (N, H+2, W+2, C)
    taps = [xp[:, kh:kh + H, kw:kw + W, :]
            for kh in range(KH) for kw in range(KW)]
    patches = jnp.concatenate(taps, axis=-1)                       # (N, H, W, 9*C)
    pt = patches.reshape(N * HW, KC).T                             # (KC, N*HW)

    # Weights: (Cout, Cin, KH, KW) -> (Cout, KH*KW*Cin), matching the patches'
    # (kh, kw, cin) contraction ordering.
    w_t = jnp.transpose(weight.astype(jnp.float32), (0, 2, 3, 1)).reshape(Cout, KC)

    # bias / gamma / beta packed into one tiny parameter block (one DMA).
    params = jnp.stack(
        [bias.astype(jnp.float32), gamma.astype(jnp.float32),
         beta.astype(jnp.float32), jnp.zeros((Cout,), jnp.float32)],
        axis=1)                                                    # (Cout, 4)

    # NOTE: on v6e/v7x, casting pt/w_t to bf16 (keeping the f32 epilogue) would
    # double MXU rate; kept f32 so results match the f32 reference to 1e-4.
    vmem = pl.BlockSpec(memory_space=pltpu.MemorySpace.VMEM)
    out = pl.pallas_call(
        _make_kernel(N, HW, Cout),
        out_shape=jax.ShapeDtypeStruct((N, Cout, HW), jnp.float32),
        in_specs=[vmem, vmem, vmem],
        out_specs=vmem,
    )(pt, w_t, params)

    # Lane-dense (N, Cout, H*W) -> NCHW is a free (contiguous) reshape.
    return out.reshape(N, Cout, H, W)


def _reference(x, weight, bias, gamma, beta):
    """Pure-JAX reference of Conv2d -> BN(train) -> ReLU in NCHW."""
    y = lax.conv_general_dilated(
        x.astype(jnp.float32), weight.astype(jnp.float32),
        window_strides=(1, 1), padding=((1, 1), (1, 1)),
        dimension_numbers=("NCHW", "OIHW", "NCHW"))
    y = y + bias.reshape(1, -1, 1, 1)
    mean = jnp.mean(y, axis=(0, 2, 3), keepdims=True)
    var = jnp.mean((y - mean) ** 2, axis=(0, 2, 3), keepdims=True)
    y = (y - mean) * lax.rsqrt(var + EPS)
    y = y * gamma.reshape(1, -1, 1, 1) + beta.reshape(1, -1, 1, 1)
    return jnp.maximum(y, 0.0)


if __name__ == "__main__":
    # ConvBlock(in_channels=4, out_channels=8)
    N, Cin, H, W = 2, 4, 16, 16
    Cout = 8

    key = jax.random.PRNGKey(0)
    k_x, k_w, k_b, k_g, k_be = jax.random.split(key, 5)

    x = jax.random.normal(k_x, (N, Cin, H, W), dtype=jnp.float32)
    weight = jax.random.normal(k_w, (Cout, Cin, KH, KW), dtype=jnp.float32) * 0.1
    bias = jax.random.normal(k_b, (Cout,), dtype=jnp.float32) * 0.1
    gamma = 1.0 + 0.1 * jax.random.normal(k_g, (Cout,), dtype=jnp.float32)
    beta = 0.1 * jax.random.normal(k_be, (Cout,), dtype=jnp.float32)

    out = jax.block_until_ready(conv_block(x, weight, bias, gamma, beta))
    ref = jax.block_until_ready(_reference(x, weight, bias, gamma, beta))
    np.testing.assert_allclose(np.asarray(out), np.asarray(ref), rtol=1e-4, atol=1e-4)

    print("KERNEL_OK")
</pallas_src>

<mosaic_0001>
module attributes {stable_mosaic.version = 11 : i64} {
  func.func @kernel(%arg0: memref<36x512xf32, #tpu.memory_space<vmem>>, %arg1: memref<8x36xf32, #tpu.memory_space<vmem>>, %arg2: memref<8x4xf32, #tpu.memory_space<vmem>>, %arg3: memref<2x8x256xf32, #tpu.memory_space<vmem>>) attributes {dimension_semantics = [], scalar_prefetch = 0 : i64, scratch_operands = 0 : i64, tpu.core_type = #tpu.core_type<tc>} {
    %c0 = arith.constant 0 : index
    %c0_0 = arith.constant 0 : index
    %0 = vector.load %arg2[%c0, %c0_0] : memref<8x4xf32, #tpu.memory_space<vmem>>, vector<8x1xf32>
    %c0_1 = arith.constant 0 : index
    %c1 = arith.constant 1 : index
    %1 = vector.load %arg2[%c0_1, %c1] : memref<8x4xf32, #tpu.memory_space<vmem>>, vector<8x1xf32>
    %c0_2 = arith.constant 0 : index
    %c2 = arith.constant 2 : index
    %2 = vector.load %arg2[%c0_2, %c2] : memref<8x4xf32, #tpu.memory_space<vmem>>, vector<8x1xf32>
    %c0_3 = arith.constant 0 : index
    %c0_4 = arith.constant 0 : index
    %3 = vector.load %arg1[%c0_3, %c0_4] : memref<8x36xf32, #tpu.memory_space<vmem>>, vector<8x36xf32>
    %c0_5 = arith.constant 0 : index
    %c0_6 = arith.constant 0 : index
    %4 = vector.load %arg0[%c0_5, %c0_6] : memref<36x512xf32, #tpu.memory_space<vmem>>, vector<36x512xf32>
    %cst = arith.constant dense<0.000000e+00> : vector<8x512xf32>
    %5 = tpu.matmul %3, %4, %cst {dimension_numbers = #tpu.dot_dimension_numbers<[1], [0], [0], [1], [0, 0, 1, 1], [], []>} : vector<8x36xf32>, vector<36x512xf32>, vector<8x512xf32> -> vector<8x512xf32>
    %6 = vector.broadcast %0 : vector<8x1xf32> to vector<8x512xf32>
    %7 = arith.addf %5, %6 : vector<8x512xf32>
    %cst_7 = arith.constant dense<0.000000e+00> : vector<8xf32>
    %8 = vector.multi_reduction <add>, %7, %cst_7 [1] : vector<8x512xf32> to vector<8xf32>
    %9 = vector.shape_cast %8 : vector<8xf32> to vector<8x1xf32>
    %cst_8 = arith.constant 0.001953125 : f32
    %10 = vector.broadcast %cst_8 : f32 to vector<8x1xf32>
    %11 = arith.mulf %9, %10 : vector<8x1xf32>
    %12 = vector.broadcast %11 : vector<8x1xf32> to vector<8x512xf32>
    %13 = arith.subf %7, %12 : vector<8x512xf32>
    %14 = arith.mulf %13, %13 : vector<8x512xf32>
    %cst_9 = arith.constant dense<0.000000e+00> : vector<8xf32>
    %15 = vector.multi_reduction <add>, %14, %cst_9 [1] : vector<8x512xf32> to vector<8xf32>
    %16 = vector.shape_cast %15 : vector<8xf32> to vector<8x1xf32>
    %cst_10 = arith.constant 0.001953125 : f32
    %17 = vector.broadcast %cst_10 : f32 to vector<8x1xf32>
    %18 = arith.mulf %16, %17 : vector<8x1xf32>
    %cst_11 = arith.constant 9.99999974E-6 : f32
    %19 = vector.broadcast %cst_11 : f32 to vector<8x1xf32>
    %20 = arith.addf %18, %19 : vector<8x1xf32>
    %21 = math.rsqrt %20 : vector<8x1xf32>
    %22 = arith.mulf %1, %21 : vector<8x1xf32>
    %23 = vector.broadcast %22 : vector<8x1xf32> to vector<8x512xf32>
    %24 = arith.mulf %13, %23 : vector<8x512xf32>
    %25 = vector.broadcast %2 : vector<8x1xf32> to vector<8x512xf32>
    %26 = arith.addf %24, %25 : vector<8x512xf32>
    %cst_12 = arith.constant 0.000000e+00 : f32
    %27 = vector.broadcast %cst_12 : f32 to vector<8x512xf32>
    %28 = arith.maximumf %26, %27 : vector<8x512xf32>
    %29 = vector.extract_strided_slice %28 {offsets = [0, 0], sizes = [8, 256], strides = [1, 1]} : vector<8x512xf32> to vector<8x256xf32>
    %c0_13 = arith.constant 0 : index
    %c0_14 = arith.constant 0 : index
    %c0_15 = arith.constant 0 : index
    %30 = vector.load %arg3[%c0_13, %c0_14, %c0_15] : memref<2x8x256xf32, #tpu.memory_space<vmem>>, vector<1x8x256xf32>
    %31 = vector.shape_cast %30 : vector<1x8x256xf32> to vector<8x256xf32>
    %32 = vector.shape_cast %29 : vector<8x256xf32> to vector<1x8x256xf32>
    tpu.vector_store %arg3[%c0_13, %c0_14, %c0_15], %32 {strides = array<i32>} : memref<2x8x256xf32, #tpu.memory_space<vmem>>, vector<1x8x256xf32>,
    %33 = vector.extract_strided_slice %28 {offsets = [0, 256], sizes = [8, 256], strides = [1, 1]} : vector<8x512xf32> to vector<8x256xf32>
    %c1_16 = arith.constant 1 : index
    %c0_17 = arith.constant 0 : index
    %c0_18 = arith.constant 0 : index
    %34 = vector.load %arg3[%c1_16, %c0_17, %c0_18] : memref<2x8x256xf32, #tpu.memory_space<vmem>>, vector<1x8x256xf32>
    %35 = vector.shape_cast %34 : vector<1x8x256xf32> to vector<8x256xf32>
    %36 = vector.shape_cast %33 : vector<8x256xf32> to vector<1x8x256xf32>
    tpu.vector_store %arg3[%c1_16, %c0_17, %c0_18], %36 {strides = array<i32>} : memref<2x8x256xf32, #tpu.memory_space<vmem>>, vector<1x8x256xf32>,
    return
  }
}

</mosaic_0001>

<bundles_post_ra>
// kernel: tpu_custom_call.1
= control target key start
LH: loop header
LB: loop body
LE: loop exit
PB: predicated region body
PF: predicated region fallthrough
CT: control target
= control target key end

     0   :  { %8 = vsyncpa [#allocation3], 0  ;;  %s348_s0 = inlined_call_operand.hbm [shape: f32[36,512], index: 0, kind: input, shape index: {}]   ;;  %s349_s1 = inlined_call_operand.vmem [shape: f32[8,36], index: 1, kind: input, shape index: {}]   ;;  %s350_s2 = inlined_call_operand.vmem [shape: f32[8,4], index: 2, kind: input, shape index: {}]   ;;  %s351_s3 = inlined_call_operand.hbm [shape: f32[2,8,256], index: 3, kind: output, shape index: {}]  }
   0x1   :  { %9 = vsyncpa [#allocation4], 0  ;;  %s14_s14 = sshll.u32 %s348_s0, 4  ;;  %s307_s15 = smov [#allocation2]   ;;  %s15_s14 = int_to_ptr.hbm [resolvable:$true] %s14_s14 }
   0x2   :  { %s16_s16 = sshll.u32 %s307_s15, 4  ;;  %s308_s17 = smov 512   ;;  %s17_s16 = int_to_ptr.vmem [resolvable:$true] %s16_s16 }
   0x3   :  { %s309_s18 = smov 32  }
   0x4   :  { %22 = dma.hbm_to_vmem [thread:$0]  %s15_s14, 2560, %s17_s16, [#allocation3], %s308_s17, %s308_s17, %s309_s18  }
   0x5   :  { %303 = dma.done.wait [#allocation3], 2560  }
   0x6   :  { %304 = vsyncadd [#allocation3], 4294964736  ;;  %v310_v0 = vmov 0   ;;  %vm62_vm0 = vcmask 1043456   ;;  %v51_v1 = vld [vmem:[#allocation2 + $0x90] sm:$0xf] }
   0x7   :  { %249 = vset.pattern.permute.xlu0 %v310_v0  ;;  %v52_v2 = vld [vmem:[#allocation2 + $0x98] sm:$0xf]  ;;  %v47_v3 = vld [vmem:[#allocation2 + $0x70] sm:$0xff]  ;;  %236 = vmatpush.msk.msra.mxu2 %vm62_vm0, %v51_v1  ;;  %v49_v5 = vld [vmem:[#allocation2 + $0x80] sm:$0xf]  ;;  %vm58_vm1 = vcmask 293888  }
   0x8   :  { %238 = vmatpush.msk.msra.mxu3 %vm62_vm0, %v52_v2  ;;  %v48_v4 = vld [vmem:[#allocation2 + $0x78] sm:$0xff]  ;;  %v50_v6 = vld [vmem:[#allocation2 + $0x88] sm:$0xf]  ;;  %232 = vmatpush.msk.msra.mxu0 %vm62_vm0, %v49_v5  ;;  %v43_v7 = vld [vmem:[#allocation2 + $0x50] sm:$0xff]  ;;  %v311_v48 = vmov 1   ;;  %v312_v49 = vmov 2  }
   0x9   :  { %234 = vmatpush.msk.msra.mxu1 %vm62_vm0, %v50_v6  ;;  %v44_v8 = vld [vmem:[#allocation2 + $0x58] sm:$0xff]  ;;  %v45_v9 = vld [vmem:[#allocation2 + $0x60] sm:$0xff]  ;;  %127 = vmatpush.msra.mxu2 %v47_v3  ;;  %v46_v10 = vld [vmem:[#allocation2 + $0x68] sm:$0xff]  ;;  %s219_s24 = sshll.u32 %s351_s3, 4  ;;  %s314_s25 = smov 256   ;;  %s220_s24 = int_to_ptr.hbm [resolvable:$true] %s219_s24 }
   0xa   :  { %147 = vmatpush.msra.mxu3 %v48_v4  ;;  %v39_v11 = vld [vmem:[#allocation2 + $0x30] sm:$0xff]  ;;  %87 = vmatpush.msra.mxu0 %v45_v9  ;;  %v40_v12 = vld [vmem:[#allocation2 + $0x38] sm:$0xff]  ;;  %v41_v13 = vld [vmem:[#allocation2 + $0x40] sm:$0xff]  ;;  %s315_s26 = smov 16  }
   0xb   :  { %107 = vmatpush.msra.mxu1 %v46_v10  ;;  %v42_v14 = vld [vmem:[#allocation2 + $0x48] sm:$0xff]  ;;  %128 = vmatpush.msra.mxu2 %v43_v7  ;;  %v37_v15 = vld [vmem:[#allocation2 + $0x20] sm:$0xff]  ;;  %v35_v16 = vld [vmem:[#allocation2 + $0x10] sm:$0xff] }
   0xc   :  { %148 = vmatpush.msra.mxu3 %v44_v8  ;;  %88 = vmatpush.msra.mxu0 %v41_v13  ;;  %v36_v17 = vld [vmem:[#allocation2 + $0x18] sm:$0xff]  ;;  %v38_v18 = vld [vmem:[#allocation2 + $0x28] sm:$0xff]  ;;  %v32_v19 = vld [vmem:[%s349_s1] sm:$0xff]  ;;  %s313_s1 = smov [#allocation5]  }
   0xd   :  { %108 = vmatpush.msra.mxu1 %v42_v14  ;;  %129 = vmatpush.msra.mxu2 %v39_v11  ;;  %v33_v20 = vld [vmem:[#allocation2] sm:$0xff]  ;;  %v34_v21 = vld [vmem:[#allocation2 + $0x8] sm:$0xff] }
   0xe   :  { %149 = vmatpush.msra.mxu3 %v40_v12  ;;  %89 = vmatpush.msra.mxu0 %v37_v15  ;;  %v31_v22 = vld [vmem:[%s350_s2] sm:$0xff]  ;;  %s217_s2 = sshll.u32 %s313_s1, 4  ;;  %s218_s2 = int_to_ptr.vmem [resolvable:$true] %s217_s2 }
   0xf   :  { %109 = vmatpush.msra.mxu1 %v38_v18  ;;  %130 = vmatpush.msra.mxu2 %v35_v16 }
  0x10   :  { %150 = vmatpush.msra.mxu3 %v36_v17  ;;  %237 = vmatmul.msk.f32.vlgmr.msra.gmra.mxu2 %vm58_vm1, %v32_v19 }
  0x11   :  { %239 = vmatmul.msk.f32.vlgmr.msra.gmra.mxu3 %vm58_vm1, %v32_v19  ;;  %90 = vmatpush.msra.mxu0 %v33_v20 }
  0x12   :  { %110 = vmatpush.msra.mxu1 %v34_v21  ;;  %233 = vmatmul.msk.f32.vlgmr.msra.gmra.mxu0 %vm58_vm1, %v32_v19 }
  0x13   :  { %235 = vmatmul.msk.f32.vlgmr.msra.gmra.mxu1 %vm58_vm1, %v32_v19  ;;  %55 = vperm.xlu0 %249, %v31_v22  }
  0x14   :  { %250 = vset.pattern.permute.xlu1 %v311_v48  ;;  %251 = vset.pattern.permute.xlu2 %v312_v49 }
  0x15   :  { %197 = vperm.xlu2 %251, %v31_v22  }
  0x1b   :  { %252 = vset.pattern.permute.xlu0 %v312_v49 }
  0x6f   :  { %v198_v62 = vpop.permute.xlu2 %197 }
  0x85   :  { %v56_v23 = vpop.permute.xlu0 %55 }
  0x8f   :  { %v92_v24 = vpop.f32.mrf.mxu0 }
  0x90   :  { %v112_v25 = vpop.f32.mrf.mxu1  ;;  %v93_v26 = vadd.f32 %v92_v24, %v56_v23 }
  0x91   :  { %v113_v27 = vadd.f32 %v112_v25, %v56_v23 }
  0x93   :  { %v155_v28 = vadd.f32 %v113_v27, %v93_v26  ;;  %v132_v29 = vpop.f32.mrf.mxu2 }
  0x94   :  { %v152_v30 = vpop.f32.mrf.mxu3  ;;  %v133_v31 = vadd.f32 %v132_v29, %v56_v23 }
  0x95   :  { %v153_v33 = vadd.f32 %v152_v30, %v56_v23 }
  0x96   :  { %v156_v32 = vadd.f32 %v155_v28, %v133_v31 }
  0x98   :  { %v157_v34 = vadd.f32 %v156_v32, %v153_v33 }
  0x9a   :  { %158 = vadd.xlane.f32.xlu0 %v157_v34 }
 0x10d   :  { %v159_v35 = vpop.xlane.xlu0 %158 }
 0x10e   :  { %v160_v36 = vmul.f32 0.001953125, %v159_v35 }
 0x110   :  { %v161_v37 = vsub.f32 %v93_v26, %v160_v36  ;;  %v162_v38 = vsub.f32 %v113_v27, %v160_v36  ;;  %v163_v39 = vsub.f32 %v133_v31, %v160_v36  ;;  %v164_v40 = vsub.f32 %v153_v33, %v160_v36 }
 0x112   :  { %v165_v41 = vmul.f32 %v161_v37, %v161_v37  ;;  %v166_v42 = vmul.f32 %v162_v38, %v162_v38  ;;  %v167_v43 = vmul.f32 %v163_v39, %v163_v39  ;;  %v168_v45 = vmul.f32 %v164_v40, %v164_v40 }
 0x114   :  { %v169_v44 = vadd.f32 %v166_v42, %v165_v41 }
 0x116   :  { %v170_v46 = vadd.f32 %v169_v44, %v167_v43 }
 0x118   :  { %v171_v47 = vadd.f32 %v170_v46, %v168_v45 }
 0x11a   :  { %172 = vadd.xlane.f32.xlu1 %v171_v47 }
 0x18d   :  { %v173_v50 = vpop.xlane.xlu1 %172 }
 0x18e   :  { %v174_v51 = vmul.f32 0.001953125, %v173_v50 }
 0x190   :  { %v175_v52 = vadd.f32 1e-05, %v174_v51 }
 0x192   :  { %253 = vrsqrt.f32 %v175_v52  ;;  %vm182_vm3 = vweird.f32 %v175_v52 }
 0x198   :  { %v254_v53 = vpop.eup %253 }
 0x199   :  { %v177_v54 = vmul.f32 %v254_v53, %v175_v52  ;;  %vm183_vm2 = vweird.f32 %v254_v53 }
 0x19a   :  { %vm184_vm4 = vmor %vm182_vm3, %vm183_vm2 }
 0x19b   :  { %v178_v55 = vmul.f32 %v254_v53, %v177_v54 }
 0x19d   :  { %v179_v56 = vmul.f32 0.5, %v178_v55 }
 0x19f   :  { %v180_v57 = vsub.f32 1.5, %v179_v56 }
 0x1a1   :  { %v181_v58 = vmul.f32 %v254_v53, %v180_v57 }
 0x1a3   :  { %v185_v59 = vsel %vm184_vm4, %v254_v53, %v181_v58 }
 0x1a4   :  { %v186_v60 = vmul.f32 %v185_v59, %v31_v22 }
 0x1a6   :  { %189 = vperm.xlu1 %250, %v186_v60  }
 0x218   :  { %v190_v61 = vpop.permute.xlu1 %189 }
 0x219   :  { %v192_v63 = vmul.f32 %v190_v61, %v161_v37  ;;  %v193_v0 = vmul.f32 %v190_v61, %v162_v38  ;;  %v194_v1 = vmul.f32 %v190_v61, %v163_v39  ;;  %v195_v2 = vmul.f32 %v190_v61, %v164_v40 }
 0x21b   :  { %v200_v3 = vadd.f32 %v198_v62, %v192_v63  ;;  %v201_v4 = vadd.f32 %v198_v62, %v193_v0  ;;  %v202_v5 = vadd.f32 %v198_v62, %v194_v1  ;;  %v203_v6 = vadd.f32 %v198_v62, %v195_v2 }
 0x21d   :  { %v204_v7 = vmax.f32 %v200_v3, 0.0  ;;  %v205_v8 = vmax.f32 %v201_v4, 0.0  ;;  %v206_v9 = vmax.f32 %v202_v5, 0.0  ;;  %v207_v10 = vmax.f32 %v203_v6, 0.0 }
 0x21f   :  { %208 = vst [vmem:[#allocation5] sm:$0xff] %v204_v7 }
 0x220   :  { %209 = vst [vmem:[#allocation5 + $0x8] sm:$0xff] %v205_v8 }
 0x221   :  { %211 = vst [vmem:[#allocation5 + $0x10] sm:$0xff] %v206_v9 }
 0x222   :  { %212 = vst [vmem:[#allocation5 + $0x18] sm:$0xff] %v207_v10 }
 0x223   :  { %225 = dma.vmem_to_hbm [thread:$0]  %s218_s2, 512, %s220_s24, [#allocation4], %s314_s25, %s314_s25, %s315_s26  }
 0x224   :  { %305 = dma.done.wait [#allocation4], 512  }
 0x225   :  { %306 = vsyncadd [#allocation4], 4294966784 }
 0x226   :  { %230 = vsyncpa [#allocation3], 1 }
 0x227   :  { %231 = vsyncpa [#allocation4], 1 }

</bundles_post_ra>
